<compile_context>
chip_gen: v5e
topology: v5e:2x2
jax: 0.10.0
libtpu: 0.0.40
codegen_flags: <defaults>
</compile_context>

<pallas_src>
import math

import numpy as np
import jax
import jax.numpy as jnp
from jax.experimental import pallas as pl
from jax.experimental.pallas import tpu as pltpu

_LOG_ADJUST = math.log(1e-6)  # negative constant used by skimage

_RGB_FROM_HED = np.array([[0.65, 0.70, 0.29],
                          [0.07, 0.99, 0.11],
                          [0.27, 0.57, 0.78]], dtype=np.float32)
_HED_FROM_RGB = np.linalg.inv(_RGB_FROM_HED).astype(np.float32)
# hed_from_rgb / log(1e-6): parameter-independent, baked into the kernel.
_M1 = (_HED_FROM_RGB / np.float32(_LOG_ADJUST)).astype(np.float32)

_STRIP = 8                                   # sublane rows per inner strip
_LANE = 1024                                 # lane width for fallback path
_TARGET_BLOCK_PX = 256 * 1024                # ~3 MiB f32 per (3, th, W) block side
_MIN_GRID = 4                                # keep >=4 blocks when possible (v7x megacore)
_MIN_W_DIRECT = 128                          # below this lanes are too sparse -> flatten
_MAX_W_DIRECT = _TARGET_BLOCK_PX // _STRIP   # above this an 8-row block blows VMEM


def _round_up(x, m):
    return (x + m - 1) // m * m


def _choose_block_rows(rows, width):
    """Rows per block: multiple of _STRIP (or the full dim when tiny),
    block <= ~3 MiB per side, and >= _MIN_GRID blocks when `rows` allows it."""
    if rows <= _STRIP:
        return rows
    by_vmem = max(_STRIP, (_TARGET_BLOCK_PX // width) // _STRIP * _STRIP)
    by_grid = _round_up(pl.cdiv(rows, _MIN_GRID), _STRIP)
    th = max(_STRIP, min(by_vmem, by_grid))
    return min(th, _round_up(rows, _STRIP))


def _hed_jitter_kernel(m2_ref, bias_ref, img_ref, out_ref):
    """Constant-folded HED jitter on one (3, th, W) tile, strip-mined by rows.

    m2_ref  : SMEM (3,3)  log(1e-6) * diag(aH, aE, 1) @ rgb_from_hed
    bias_ref: SMEM (3,)   log(1e-6) * [bH, bE, 0] @ rgb_from_hed
    img_ref : VMEM (3, th, W) f32 rgb in [0, 1]
    out_ref : VMEM (3, th, W) f32 rgb in [0, 1]
    """
    # Hoist the 12 SMEM scalar reads out of the strip loop.
    m2 = [[m2_ref[i, k] for k in range(3)] for i in range(3)]
    bias = [bias_ref[k] for k in range(3)]

    def process(r, nr):
        # rgb -> log planes for this strip (EUP log, VPU max)
        l = [jnp.log(jnp.maximum(img_ref[c, pl.ds(r, nr), :], 1e-6))
             for c in range(3)]
        # (px,3) @ M1 unrolled as plane math, then relu
        hed = [jnp.maximum(l[0] * _M1[0, j] + l[1] * _M1[1, j] + l[2] * _M1[2, j],
                           0.0)
               for j in range(3)]
        # (px,3) @ M2 + bias (jitter, -log scale and negation already folded in)
        for k in range(3):
            log_rgb = (hed[0] * m2[0][k] + hed[1] * m2[1][k] + hed[2] * m2[2][k]
                       + bias[k])
            # exp() > 0, so the lower clamp of the original clip(.,0,1) is dead.
            out_ref[k, pl.ds(r, nr), :] = jnp.minimum(jnp.exp(log_rgb), 1.0)

    rows = img_ref.shape[1]
    n_full = rows // _STRIP
    if n_full > 0:
        @pl.loop(0, n_full)
        def _(s):
            process(pl.multiple_of(s * _STRIP, _STRIP), _STRIP)
    rem = rows % _STRIP
    if rem:  # only for tiny blocks where the block equals a sub-8-row full dim
        process(n_full * _STRIP, rem)


def _run(x, m2, bias, th):
    """pallas_call over row-blocks of x: (3, R, W) f32 -> (3, R, W) f32."""
    C, R, W = x.shape
    return pl.pallas_call(
        _hed_jitter_kernel,
        out_shape=jax.ShapeDtypeStruct((C, R, W), jnp.float32),
        grid=(pl.cdiv(R, th),),
        in_specs=[
            pl.BlockSpec(memory_space=pltpu.SMEM),           # m2   (3,3)
            pl.BlockSpec(memory_space=pltpu.SMEM),           # bias (3,)
            pl.BlockSpec((C, th, W), lambda i: (0, i, 0)),   # image planes
        ],
        out_specs=pl.BlockSpec((C, th, W), lambda i: (0, i, 0)),
        # Output reuses the image HBM buffer; per-step blocks are disjoint.
        input_output_aliases={2: 0},
        compiler_params=pltpu.CompilerParams(
            dimension_semantics=("parallel",),   # shards row-blocks across TCs (v7x)
            vmem_limit_bytes=32 * 1024 * 1024,   # 2in+2out ~3 MiB blocks fit easily
        ),
    )(m2, bias, x)


@jax.jit
def hed_jitter_pallas(image, params):
    """image: (3, H, W) float32 in [0,1]; params = [alpha_H, alpha_E, beta_H, beta_E]."""
    C, H, W = image.shape
    assert C == 3
    image = image.astype(jnp.float32)

    # Constant folding (cheap scalar JAX, once per call):
    la = jnp.float32(_LOG_ADJUST)
    rgb_from_hed = jnp.asarray(_RGB_FROM_HED)
    scale = jnp.stack([params[0], params[1], jnp.float32(1.0)])
    m2 = la * (scale[:, None] * rgb_from_hed)
    bias = la * (jnp.stack([params[2], params[3], jnp.float32(0.0)]) @ rgb_from_hed)

    if _MIN_W_DIRECT <= W <= _MAX_W_DIRECT:
        # Fast path: tile (3, H, W) directly -- no pad / reshape / slice copies.
        th = _choose_block_rows(H, W)
        return _run(image, m2, bias, th)

    # Fallback (narrow or extremely wide W): flatten pixels into lane-dense
    # (rows, 1024) planes.  Pads at most _LANE-1 elements per channel; the pad
    # and the final slice are skipped entirely when H*W is lane-aligned.
    n = H * W
    rows = pl.cdiv(n, _LANE)
    n_pad = rows * _LANE
    flat = image.reshape(C, n)
    if n_pad != n:
        flat = jnp.pad(flat, ((0, 0), (0, n_pad - n)))
    x = flat.reshape(C, rows, _LANE)
    tr = _choose_block_rows(rows, _LANE)
    out = _run(x, m2, bias, tr).reshape(C, n_pad)
    if n_pad != n:
        out = out[:, :n]
    return out.reshape(C, H, W)


def sample_hed_params(key, alpha=(0.95, 1.05), beta=(-0.05, 0.05)):
    """Matches the module's uniform alpha/beta sampling (torch RNG -> jax.random)."""
    k1, k2, k3, k4 = jax.random.split(key, 4)
    return jnp.stack([
        jax.random.uniform(k1, (), jnp.float32, alpha[0], alpha[1]),
        jax.random.uniform(k2, (), jnp.float32, alpha[0], alpha[1]),
        jax.random.uniform(k3, (), jnp.float32, beta[0], beta[1]),
        jax.random.uniform(k4, (), jnp.float32, beta[0], beta[1]),
    ])


def hed_jitter_forward(image, target, key, alpha=(0.95, 1.05), beta=(-0.05, 0.05)):
    """Full HEDJitter.forward equivalent for float images in [0, 1]."""
    params = sample_hed_params(key, alpha, beta)
    # TODO(synk): integer-image convert_image_dtype (uint8 <-> float) is not handled;
    # float inputs follow the identity float path of F.convert_image_dtype.
    # TODO(synk): if the consumer accepts bf16/uint8 output, store that dtype in-kernel
    # to cut write traffic (bandwidth-bound kernel).
    out = hed_jitter_pallas(image.astype(jnp.float32), params)
    return out.astype(image.dtype), target


def _reference(image, params):
    """Pure-JAX reference of the original (un-folded) math for a sanity check."""
    rgb_from_hed = jnp.asarray(_RGB_FROM_HED)
    hed_from_rgb = jnp.asarray(_HED_FROM_RGB)
    hwc = jnp.transpose(image, (1, 2, 0)).astype(jnp.float32)
    x = jnp.maximum(hwc, 1e-6)
    hed = jnp.maximum((jnp.log(x) / _LOG_ADJUST) @ hed_from_rgb, 0.0)
    hed = hed.at[..., 0].set(hed[..., 0] * params[0] + params[2])
    hed = hed.at[..., 1].set(hed[..., 1] * params[1] + params[3])
    log_rgb = -(hed * (-_LOG_ADJUST)) @ rgb_from_hed
    rgb = jnp.clip(jnp.exp(log_rgb), 0.0, 1.0)
    return jnp.transpose(rgb, (2, 0, 1))


if __name__ == "__main__":
    key = jax.random.PRNGKey(0)
    k_fwd, *k_imgs = jax.random.split(key, 6)

    params = sample_hed_params(k_fwd)

    # Cross-check kernel vs pure-JAX reference:
    #   (16,16) / (37,53): narrow-W flatten fallback (incl. unaligned pad path)
    #   (37,136): direct path with ragged last row-block and W not a 128-multiple
    #   (64,128): direct path, fully aligned, multi-block grid
    shapes = [(16, 16), (37, 53), (37, 136), (64, 128)]
    for k_img, (h, w) in zip(k_imgs, shapes):
        img = jax.random.uniform(k_img, (3, h, w), jnp.float32)  # rgb in [0,1]
        ref = _reference(img, params)
        out = jax.block_until_ready(hed_jitter_pallas(img, params))
        assert out.shape == (3, h, w) and out.dtype == jnp.float32
        assert jnp.allclose(out, ref, atol=1e-5, rtol=1e-5), (h, w)

    # Exercise the full forward path once (random params + target passthrough).
    target = {"boxes": jnp.zeros((2, 4), jnp.float32),
              "labels": jnp.zeros((2,), jnp.int32)}
    img = jax.random.uniform(k_imgs[0], (3, 37, 136), jnp.float32)
    out_img, out_tgt = hed_jitter_forward(img, target, k_fwd)
    out_img = jax.block_until_ready(out_img)
    assert out_img.shape == (3, 37, 136)

    print("KERNEL_OK")
</pallas_src>

<mosaic_0001>
module attributes {stable_mosaic.version = 11 : i64} {
  func.func @_hed_jitter_kernel(%arg0: i32, %arg1: memref<3x3xf32, #tpu.memory_space<smem>>, %arg2: memref<3xf32, #tpu.memory_space<smem>>, %arg3: memref<3x1x1024xf32, #tpu.memory_space<vmem>>, %arg4: memref<3x1x1024xf32, #tpu.memory_space<vmem>>) attributes {dimension_semantics = [#tpu.dimension_semantics<parallel>], iteration_bounds = array<i64: 1>, scalar_prefetch = 0 : i64, scratch_operands = 0 : i64, tpu.core_type = #tpu.core_type<tc>, window_params = [{transform_indices = @transform_0, window_bounds = array<i64: 3, 3>}, {transform_indices = @transform_1, window_bounds = array<i64: 3>}, {transform_indices = @transform_2, window_bounds = array<i64: 3, 1, 1024>}, {transform_indices = @transform_3, window_bounds = array<i64: 3, 1, 1024>}]} {
    %c0 = arith.constant 0 : index
    %c0_0 = arith.constant 0 : index
    %0 = memref.load %arg1[%c0, %c0_0] : memref<3x3xf32, #tpu.memory_space<smem>>
    %c0_1 = arith.constant 0 : index
    %c1 = arith.constant 1 : index
    %1 = memref.load %arg1[%c0_1, %c1] : memref<3x3xf32, #tpu.memory_space<smem>>
    %c0_2 = arith.constant 0 : index
    %c2 = arith.constant 2 : index
    %2 = memref.load %arg1[%c0_2, %c2] : memref<3x3xf32, #tpu.memory_space<smem>>
    %c1_3 = arith.constant 1 : index
    %c0_4 = arith.constant 0 : index
    %3 = memref.load %arg1[%c1_3, %c0_4] : memref<3x3xf32, #tpu.memory_space<smem>>
    %c1_5 = arith.constant 1 : index
    %c1_6 = arith.constant 1 : index
    %4 = memref.load %arg1[%c1_5, %c1_6] : memref<3x3xf32, #tpu.memory_space<smem>>
    %c1_7 = arith.constant 1 : index
    %c2_8 = arith.constant 2 : index
    %5 = memref.load %arg1[%c1_7, %c2_8] : memref<3x3xf32, #tpu.memory_space<smem>>
    %c2_9 = arith.constant 2 : index
    %c0_10 = arith.constant 0 : index
    %6 = memref.load %arg1[%c2_9, %c0_10] : memref<3x3xf32, #tpu.memory_space<smem>>
    %c2_11 = arith.constant 2 : index
    %c1_12 = arith.constant 1 : index
    %7 = memref.load %arg1[%c2_11, %c1_12] : memref<3x3xf32, #tpu.memory_space<smem>>
    %c2_13 = arith.constant 2 : index
    %c2_14 = arith.constant 2 : index
    %8 = memref.load %arg1[%c2_13, %c2_14] : memref<3x3xf32, #tpu.memory_space<smem>>
    %c0_15 = arith.constant 0 : index
    %9 = memref.load %arg2[%c0_15] : memref<3xf32, #tpu.memory_space<smem>>
    %c1_16 = arith.constant 1 : index
    %10 = memref.load %arg2[%c1_16] : memref<3xf32, #tpu.memory_space<smem>>
    %c2_17 = arith.constant 2 : index
    %11 = memref.load %arg2[%c2_17] : memref<3xf32, #tpu.memory_space<smem>>
    %c0_18 = arith.constant 0 : index
    %c0_19 = arith.constant 0 : index
    %c0_20 = arith.constant 0 : index
    %12 = vector.load %arg3[%c0_18, %c0_19, %c0_20] : memref<3x1x1024xf32, #tpu.memory_space<vmem>>, vector<1x1x1024xf32>
    %13 = vector.shape_cast %12 : vector<1x1x1024xf32> to vector<1x1024xf32>
    %cst = arith.constant 9.99999997E-7 : f32
    %14 = vector.broadcast %cst : f32 to vector<1x1024xf32>
    %15 = arith.maximumf %13, %14 : vector<1x1024xf32>
    %16 = math.log %15 : vector<1x1024xf32>
    %c1_21 = arith.constant 1 : index
    %c0_22 = arith.constant 0 : index
    %c0_23 = arith.constant 0 : index
    %17 = vector.load %arg3[%c1_21, %c0_22, %c0_23] : memref<3x1x1024xf32, #tpu.memory_space<vmem>>, vector<1x1x1024xf32>
    %18 = vector.shape_cast %17 : vector<1x1x1024xf32> to vector<1x1024xf32>
    %cst_24 = arith.constant 9.99999997E-7 : f32
    %19 = vector.broadcast %cst_24 : f32 to vector<1x1024xf32>
    %20 = arith.maximumf %18, %19 : vector<1x1024xf32>
    %21 = math.log %20 : vector<1x1024xf32>
    %c2_25 = arith.constant 2 : index
    %c0_26 = arith.constant 0 : index
    %c0_27 = arith.constant 0 : index
    %22 = vector.load %arg3[%c2_25, %c0_26, %c0_27] : memref<3x1x1024xf32, #tpu.memory_space<vmem>>, vector<1x1x1024xf32>
    %23 = vector.shape_cast %22 : vector<1x1x1024xf32> to vector<1x1024xf32>
    %cst_28 = arith.constant 9.99999997E-7 : f32
    %24 = vector.broadcast %cst_28 : f32 to vector<1x1024xf32>
    %25 = arith.maximumf %23, %24 : vector<1x1024xf32>
    %26 = math.log %25 : vector<1x1024xf32>
    %cst_29 = arith.constant -0.135932937 : f32
    %27 = vector.broadcast %cst_29 : f32 to vector<1x1024xf32>
    %28 = arith.mulf %16, %27 : vector<1x1024xf32>
    %cst_30 = arith.constant 0.0047705844 : f32
    %29 = vector.broadcast %cst_30 : f32 to vector<1x1024xf32>
    %30 = arith.mulf %21, %29 : vector<1x1024xf32>
    %31 = arith.addf %28, %30 : vector<1x1024xf32>
    %cst_31 = arith.constant 0.0435675122 : f32
    %32 = vector.broadcast %cst_31 : f32 to vector<1x1024xf32>
    %33 = arith.mulf %26, %32 : vector<1x1024xf32>
    %34 = arith.addf %31, %33 : vector<1x1024xf32>
    %cst_32 = arith.constant 0.000000e+00 : f32
    %35 = vector.broadcast %cst_32 : f32 to vector<1x1024xf32>
    %36 = arith.maximumf %34, %35 : vector<1x1024xf32>
    %cst_33 = arith.constant 0.0729382187 : f32
    %37 = vector.broadcast %cst_33 : f32 to vector<1x1024xf32>
    %38 = arith.mulf %16, %37 : vector<1x1024xf32>
    %cst_34 = arith.constant -0.0821345224 : f32
    %39 = vector.broadcast %cst_34 : f32 to vector<1x1024xf32>
    %40 = arith.mulf %21, %39 : vector<1x1024xf32>
    %41 = arith.addf %38, %40 : vector<1x1024xf32>
    %cst_35 = arith.constant 0.034773536 : f32
    %42 = vector.broadcast %cst_35 : f32 to vector<1x1024xf32>
    %43 = arith.mulf %26, %42 : vector<1x1024xf32>
    %44 = arith.addf %41, %43 : vector<1x1024xf32>
    %cst_36 = arith.constant 0.000000e+00 : f32
    %45 = vector.broadcast %cst_36 : f32 to vector<1x1024xf32>
    %46 = arith.maximumf %44, %45 : vector<1x1024xf32>
    %cst_37 = arith.constant 0.0402530096 : f32
    %47 = vector.broadcast %cst_37 : f32 to vector<1x1024xf32>
    %48 = arith.mulf %16, %47 : vector<1x1024xf32>
    %cst_38 = arith.constant 0.00980939437 : f32
    %49 = vector.broadcast %cst_38 : f32 to vector<1x1024xf32>
    %50 = arith.mulf %21, %49 : vector<1x1024xf32>
    %51 = arith.addf %48, %50 : vector<1x1024xf32>
    %cst_39 = arith.constant -0.113900103 : f32
    %52 = vector.broadcast %cst_39 : f32 to vector<1x1024xf32>
    %53 = arith.mulf %26, %52 : vector<1x1024xf32>
    %54 = arith.addf %51, %53 : vector<1x1024xf32>
    %cst_40 = arith.constant 0.000000e+00 : f32
    %55 = vector.broadcast %cst_40 : f32 to vector<1x1024xf32>
    %56 = arith.maximumf %54, %55 : vector<1x1024xf32>
    %57 = vector.broadcast %0 : f32 to vector<1x1024xf32>
    %58 = arith.mulf %36, %57 : vector<1x1024xf32>
    %59 = vector.broadcast %3 : f32 to vector<1x1024xf32>
    %60 = arith.mulf %46, %59 : vector<1x1024xf32>
    %61 = arith.addf %58, %60 : vector<1x1024xf32>
    %62 = vector.broadcast %6 : f32 to vector<1x1024xf32>
    %63 = arith.mulf %56, %62 : vector<1x1024xf32>
    %64 = arith.addf %61, %63 : vector<1x1024xf32>
    %65 = vector.broadcast %9 : f32 to vector<1x1024xf32>
    %66 = arith.addf %64, %65 : vector<1x1024xf32>
    %67 = math.exp %66 : vector<1x1024xf32>
    %cst_41 = arith.constant 1.000000e+00 : f32
    %68 = vector.broadcast %cst_41 : f32 to vector<1x1024xf32>
    %69 = arith.minimumf %67, %68 : vector<1x1024xf32>
    %c0_42 = arith.constant 0 : index
    %c0_43 = arith.constant 0 : index
    %c0_44 = arith.constant 0 : index
    %70 = vector.load %arg4[%c0_42, %c0_43, %c0_44] : memref<3x1x1024xf32, #tpu.memory_space<vmem>>, vector<1x1x1024xf32>
    %71 = vector.shape_cast %70 : vector<1x1x1024xf32> to vector<1x1024xf32>
    %72 = vector.shape_cast %69 : vector<1x1024xf32> to vector<1x1x1024xf32>
    tpu.vector_store %arg4[%c0_42, %c0_43, %c0_44], %72 {strides = array<i32>} : memref<3x1x1024xf32, #tpu.memory_space<vmem>>, vector<1x1x1024xf32>,
    %73 = vector.broadcast %1 : f32 to vector<1x1024xf32>
    %74 = arith.mulf %36, %73 : vector<1x1024xf32>
    %75 = vector.broadcast %4 : f32 to vector<1x1024xf32>
    %76 = arith.mulf %46, %75 : vector<1x1024xf32>
    %77 = arith.addf %74, %76 : vector<1x1024xf32>
    %78 = vector.broadcast %7 : f32 to vector<1x1024xf32>
    %79 = arith.mulf %56, %78 : vector<1x1024xf32>
    %80 = arith.addf %77, %79 : vector<1x1024xf32>
    %81 = vector.broadcast %10 : f32 to vector<1x1024xf32>
    %82 = arith.addf %80, %81 : vector<1x1024xf32>
    %83 = math.exp %82 : vector<1x1024xf32>
    %cst_45 = arith.constant 1.000000e+00 : f32
    %84 = vector.broadcast %cst_45 : f32 to vector<1x1024xf32>
    %85 = arith.minimumf %83, %84 : vector<1x1024xf32>
    %c1_46 = arith.constant 1 : index
    %c0_47 = arith.constant 0 : index
    %c0_48 = arith.constant 0 : index
    %86 = vector.load %arg4[%c1_46, %c0_47, %c0_48] : memref<3x1x1024xf32, #tpu.memory_space<vmem>>, vector<1x1x1024xf32>
    %87 = vector.shape_cast %86 : vector<1x1x1024xf32> to vector<1x1024xf32>
    %88 = vector.shape_cast %85 : vector<1x1024xf32> to vector<1x1x1024xf32>
    tpu.vector_store %arg4[%c1_46, %c0_47, %c0_48], %88 {strides = array<i32>} : memref<3x1x1024xf32, #tpu.memory_space<vmem>>, vector<1x1x1024xf32>,
    %89 = vector.broadcast %2 : f32 to vector<1x1024xf32>
    %90 = arith.mulf %36, %89 : vector<1x1024xf32>
    %91 = vector.broadcast %5 : f32 to vector<1x1024xf32>
    %92 = arith.mulf %46, %91 : vector<1x1024xf32>
    %93 = arith.addf %90, %92 : vector<1x1024xf32>
    %94 = vector.broadcast %8 : f32 to vector<1x1024xf32>
    %95 = arith.mulf %56, %94 : vector<1x1024xf32>
    %96 = arith.addf %93, %95 : vector<1x1024xf32>
    %97 = vector.broadcast %11 : f32 to vector<1x1024xf32>
    %98 = arith.addf %96, %97 : vector<1x1024xf32>
    %99 = math.exp %98 : vector<1x1024xf32>
    %cst_49 = arith.constant 1.000000e+00 : f32
    %100 = vector.broadcast %cst_49 : f32 to vector<1x1024xf32>
    %101 = arith.minimumf %99, %100 : vector<1x1024xf32>
    %c2_50 = arith.constant 2 : index
    %c0_51 = arith.constant 0 : index
    %c0_52 = arith.constant 0 : index
    %102 = vector.load %arg4[%c2_50, %c0_51, %c0_52] : memref<3x1x1024xf32, #tpu.memory_space<vmem>>, vector<1x1x1024xf32>
    %103 = vector.shape_cast %102 : vector<1x1x1024xf32> to vector<1x1024xf32>
    %104 = vector.shape_cast %101 : vector<1x1024xf32> to vector<1x1x1024xf32>
    tpu.vector_store %arg4[%c2_50, %c0_51, %c0_52], %104 {strides = array<i32>} : memref<3x1x1024xf32, #tpu.memory_space<vmem>>, vector<1x1x1024xf32>,
    return
  }
  func.func @transform_0(%arg0: i32) -> (i32, i32) {
    %c0_i32 = arith.constant 0 : i32
    %c0_i32_0 = arith.constant 0 : i32
    %c0_i32_1 = arith.constant 0 : i32
    return %c0_i32, %c0_i32_0 : i32, i32
  }
  func.func @transform_1(%arg0: i32) -> i32 {
    %c0_i32 = arith.constant 0 : i32
    %c0_i32_0 = arith.constant 0 : i32
    return %c0_i32 : i32
  }
  func.func @transform_2(%arg0: i32) -> (i32, i32, i32) {
    %c0_i32 = arith.constant 0 : i32
    %c0_i32_0 = arith.constant 0 : i32
    %c0_i32_1 = arith.constant 0 : i32
    return %c0_i32, %arg0, %c0_i32_0 : i32, i32, i32
  }
  func.func @transform_3(%arg0: i32) -> (i32, i32, i32) {
    %c0_i32 = arith.constant 0 : i32
    %c0_i32_0 = arith.constant 0 : i32
    %c0_i32_1 = arith.constant 0 : i32
    return %c0_i32, %arg0, %c0_i32_0 : i32, i32, i32
  }
}

</mosaic_0001>

<bundles_post_ra>
// kernel: hed_jitter_pallas.1
= control target key start
LH: loop header
LB: loop body
LE: loop exit
PB: predicated region body
PF: predicated region fallthrough
CT: control target
= control target key end

     0   :  { %8 = vsyncpa [#allocation3], 0  ;;  %s271_s0 = inlined_call_operand.vmem [shape: f32[3,3], index: 0, kind: input, shape index: {}]   ;;  %s272_s1 = inlined_call_operand.vmem [shape: f32[3], index: 1, kind: input, shape index: {}]   ;;  %s273_s2 = inlined_call_operand.vmem [shape: f32[3,1,1024], index: 2, kind: input, shape index: {}, may-alias: {2,3}]   ;;  %s274_s3 = inlined_call_operand.vmem [shape: f32[3,1,1024], index: 3, kind: output, shape index: {}, may-alias: {2,3}]  }
   0x1   :  { %s15_s14 = sshll.u32 %s271_s0, 4  ;;  %s16_s14 = int_to_ptr.vmem [resolvable:$true] %s15_s14 }
   0x2   :  { %9 = vsyncpa [#allocation5], 0  ;;  %s24_s17 = sshll.u32 %s272_s1, 4  ;;  %s189_s18 = smov [#allocation2]   ;;  %s25_s17 = int_to_ptr.vmem [resolvable:$true] %s24_s17 }
   0x3   :  { %18 = dma.vmem_to_smem %s16_s14, 64, %s189_s18, [#allocation3]  }
   0x4   :  { %s190_s19 = smov [#allocation4]  }
   0x5   :  { %27 = dma.vmem_to_smem %s25_s17, 16, %s190_s19, [#allocation5]  }
   0x6   :  { %185 = dma.done.wait [#allocation3], 64  }
   0x7   :  { %186 = vsyncadd [#allocation3], 4294967232 }
   0x8   :  { %187 = dma.done.wait [#allocation5], 16  }
   0x9   :  { %188 = vsyncadd [#allocation5], 4294967280 }
   0xa   :  { %38 = sfence }
   0xb   :  { %v51_v0 = vld [vmem:[%s273_s2] sm:$0xff]  ;;  %v143_v1 = vld [vmem:[%s273_s2 + $0x8] sm:$0xff]  ;;  %v144_v2 = vld [vmem:[%s273_s2 + $0x10] sm:$0xff]  ;;  %s226_s24 = sld [smem:[#allocation2]] }
   0xc   :  { %v52_v3 = vmax.f32 %v51_v0, 1e-06  ;;  %v57_v4 = vmax.f32 %v143_v1, 1e-06  ;;  %v62_v5 = vmax.f32 %v144_v2, 1e-06 }
   0xd   :  { %s228_s25 = sld [smem:[#allocation2 + $0x80]] }
   0xe   :  { %149 = vlog2.f32 %v52_v3  ;;  %s230_s26 = sld [smem:[#allocation2 + $0x100]] }
   0xf   :  { %151 = vlog2.f32 %v57_v4  ;;  %s232_s27 = sld [smem:[#allocation2 + $0x1]] }
  0x10   :  { %153 = vlog2.f32 %v62_v5  ;;  %s234_s28 = sld [smem:[#allocation2 + $0x81]] }
  0x11   :  { %s236_s29 = sld [smem:[#allocation2 + $0x101]]  ;;  %v83_v24 = vstv %s226_s24 }
  0x12   :  { %s238_s2 = sld [smem:[#allocation2 + $0x2]] }
  0x13   :  { %s240_s30 = sld [smem:[#allocation2 + $0x82]]  ;;  %v85_v27 = vstv %s228_s25 }
  0x14   :  { %v150_v6 = vpop.eup %149  ;;  %s242_s4 = sld [smem:[#allocation2 + $0x102]]  ;;  %v88_v28 = vstv %s230_s26 }
  0x15   :  { %v152_v7 = vpop.eup %151  ;;  %v54_v8 = vmul.f32 0.6931472, %v150_v6  ;;  %s244_s5 = sld [smem:[#allocation4]]  ;;  %v97_v30 = vstv %s232_s27 }
  0x16   :  { %v154_v9 = vpop.eup %153  ;;  %v59_v10 = vmul.f32 0.6931472, %v152_v7  ;;  %s247_s6 = sld [smem:[#allocation4 + $0x1]]  ;;  %v99_v31 = vstv %s234_s28 }
  0x17   :  { %v64_v11 = vmul.f32 0.6931472, %v154_v9  ;;  %v65_v12 = vmul.f32 -0.13593294, %v54_v8  ;;  %v71_v13 = vmul.f32 0.07293822, %v54_v8  ;;  %v102_v32 = vstv %s236_s29 }
  0x18   :  { %v66_v14 = vmul.f32 0.0047705844, %v59_v10  ;;  %v72_v15 = vmul.f32 -0.08213452, %v59_v10  ;;  %v77_v16 = vmul.f32 0.04025301, %v54_v8  ;;  %v112_v35 = vstv %s238_s2 }
  0x19   :  { %v68_v17 = vmul.f32 0.043567512, %v64_v11  ;;  %v74_v18 = vmul.f32 0.034773536, %v64_v11  ;;  %v78_v19 = vmul.f32 0.009809394, %v59_v10  ;;  %v114_v36 = vstv %s240_s30 }
  0x1a   :  { %v67_v20 = vadd.f32 %v66_v14, %v65_v12  ;;  %v73_v21 = vadd.f32 %v72_v15, %v71_v13  ;;  %v80_v22 = vmul.f32 -0.1139001, %v64_v11  ;;  %s251_s7 = sld [smem:[#allocation4 + $0x2]]  ;;  %v117_v38 = vstv %s242_s4 }
  0x1b   :  { %v79_v23 = vadd.f32 %v78_v19, %v77_v16  ;;  %v91_v50 = vstv %s244_s5 }
  0x1c   :  { %v69_v25 = vadd.f32 %v68_v17, %v67_v20  ;;  %v75_v26 = vadd.f32 %v74_v18, %v73_v21  ;;  %v105_v51 = vstv %s247_s6 }
  0x1d   :  { %v81_v29 = vadd.f32 %v80_v22, %v79_v23 }
  0x1e   :  { %v70_v33 = vmax.f32 %v69_v25, 0.0  ;;  %v76_v34 = vmax.f32 %v75_v26, 0.0 }
  0x1f   :  { %v82_v37 = vmax.f32 %v81_v29, 0.0 }
  0x20   :  { %v84_v39 = vmul.f32 %v83_v24, %v70_v33  ;;  %v86_v40 = vmul.f32 %v85_v27, %v76_v34  ;;  %v98_v41 = vmul.f32 %v97_v30, %v70_v33  ;;  %v100_v42 = vmul.f32 %v99_v31, %v76_v34 }
  0x21   :  { %v89_v43 = vmul.f32 %v88_v28, %v82_v37  ;;  %v103_v44 = vmul.f32 %v102_v32, %v82_v37  ;;  %v113_v45 = vmul.f32 %v112_v35, %v70_v33  ;;  %v115_v46 = vmul.f32 %v114_v36, %v76_v34 }
  0x22   :  { %v87_v47 = vadd.f32 %v86_v40, %v84_v39  ;;  %v101_v48 = vadd.f32 %v100_v42, %v98_v41  ;;  %v118_v49 = vmul.f32 %v117_v38, %v82_v37  ;;  %v120_v55 = vstv %s251_s7 }
  0x23   :  { %v116_v52 = vadd.f32 %v115_v46, %v113_v45 }
  0x24   :  { %v90_v53 = vadd.f32 %v89_v43, %v87_v47  ;;  %v104_v54 = vadd.f32 %v103_v44, %v101_v48 }
  0x25   :  { %v119_v56 = vadd.f32 %v118_v49, %v116_v52 }
  0x26   :  { %v92_v57 = vadd.f32 %v91_v50, %v90_v53  ;;  %v106_v58 = vadd.f32 %v105_v51, %v104_v54 }
  0x27   :  { %v121_v59 = vadd.f32 %v120_v55, %v119_v56 }
  0x28   :  { %v93_v60 = vmul.f32 1.442695, %v92_v57  ;;  %v107_v61 = vmul.f32 1.442695, %v106_v58 }
  0x29   :  { %v122_v62 = vmul.f32 1.442695, %v121_v59 }
  0x2a   :  { %155 = vpow2.f32 %v93_v60 }
  0x2b   :  { %157 = vpow2.f32 %v107_v61 }
  0x2c   :  { %159 = vpow2.f32 %v122_v62 }
  0x30   :  { %v156_v63 = vpop.eup %155 }
  0x31   :  { %v158_v0 = vpop.eup %157  ;;  %v95_v1 = vmin.f32 %v156_v63, 1.0 }
  0x32   :  { %v160_v2 = vpop.eup %159  ;;  %v109_v3 = vmin.f32 %v158_v0, 1.0 }
  0x33   :  { %96 = vst [vmem:[%s274_s3] sm:$0xff] %v95_v1  ;;  %v124_v4 = vmin.f32 %v160_v2, 1.0 }
  0x34   :  { %145 = vst [vmem:[%s274_s3 + $0x8] sm:$0xff] %v109_v3 }
  0x35   :  { %146 = vst [vmem:[%s274_s3 + $0x10] sm:$0xff] %v124_v4 }
  0x36   :  { %131 = vsyncpa [#allocation3], 1 }
  0x37   :  { %132 = vsyncpa [#allocation5], 1 }

</bundles_post_ra>
